<compile_context>
chip_gen: v6e
topology: v6e:2x2x1
jax: 0.10.0
libtpu: 0.0.40
codegen_flags: <defaults>
</compile_context>

<pallas_src>
import math

import jax
import jax.numpy as jnp
from jax.experimental import pallas as pl
from jax.experimental.pallas import tpu as pltpu

# `low` / `high` are module-level globals in the original SAC_cons.py; fix them here.
LOW = -2.0
HIGH = 2.0
_LOG_SQRT_2PI = 0.5 * math.log(2.0 * math.pi)


def _policy_kernel(x_ref, eps_ref,
                   w1_ref, b1_ref, w2_ref, b2_ref, w3_ref, b3_ref,
                   wh_ref, bh_ref, out_ref):
    act_dim = eps_ref.shape[-1]

    h = jnp.dot(x_ref[...], w1_ref[...], preferred_element_type=jnp.float32) + b1_ref[...]
    h = jnp.maximum(h, 0.0)
    h = jnp.dot(h, w2_ref[...], preferred_element_type=jnp.float32) + b2_ref[...]
    h = jnp.maximum(h, 0.0)
    h = jnp.dot(h, w3_ref[...], preferred_element_type=jnp.float32) + b3_ref[...]
    h = jnp.maximum(h, 0.0)

    # Fused mu / std head: single matmul, then static lane split.
    head = jnp.dot(h, wh_ref[...], preferred_element_type=jnp.float32) + bh_ref[...]
    mu = head[:, :act_dim]
    pre = head[:, act_dim:]

    # softplus(pre), numerically stable.
    std = jnp.maximum(pre, 0.0) + jnp.log(1.0 + jnp.exp(-jnp.abs(pre)))

    eps = eps_ref[...]
    sample = mu + std * eps                  # Normal(mu, std).rsample()
    a = jnp.tanh(sample)
    # Normal log_prob at `sample` plus tanh correction, with the two logs merged:
    #   -eps^2/2 - log(std) - log(sqrt(2pi)) - log(1 - a^2 + 1e-6)
    log_prob = (-0.5 * eps * eps
                - jnp.log(std * (1.0 - a * a + 1e-6))
                - _LOG_SQRT_2PI)
    action = LOW + (a + 1.0) * ((HIGH - LOW) * 0.5)

    out_ref[...] = jnp.concatenate([action, log_prob], axis=-1)


def _round_up(n, m):
    return ((n + m - 1) // m) * m


def policy_forward(x, eps, params, *, block_b=512):
    """x: [B, state_dim], eps: [B, action_dim] -> (action [B, A], log_prob [B, A])."""
    batch, state_dim = x.shape
    act_dim = params["wmu"].shape[1]

    # Fuse the two heads wrapper-side: [H, 2A] weight, [1, 2A] bias.
    w_head = jnp.concatenate([params["wmu"], params["wstd"]], axis=1)
    b_head = jnp.concatenate([params["bmu"], params["bstd"]], axis=1)

    # Batch tile: multiple of 8 sublanes, capped at block_b.  Pad the batch so
    # the tile divides it (padded rows are zeros and are sliced off afterwards).
    tb = min(_round_up(block_b, 8), _round_up(batch, 8))
    b_pad = _round_up(batch, tb)
    if b_pad != batch:
        pad = b_pad - batch
        x = jnp.pad(x, ((0, pad), (0, 0)))
        eps = jnp.pad(eps, ((0, pad), (0, 0)))

    grid = (pl.cdiv(b_pad, tb),)

    def tiled(feat):
        return pl.BlockSpec((tb, feat), lambda i: (i, 0))

    def resident(arr):
        # Same (whole-array) block every grid step -> stays VMEM-resident.
        return pl.BlockSpec(arr.shape, lambda i: (0, 0))

    out = pl.pallas_call(
        _policy_kernel,
        grid=grid,
        in_specs=[
            tiled(state_dim), tiled(act_dim),
            resident(params["w1"]), resident(params["b1"]),
            resident(params["w2"]), resident(params["b2"]),
            resident(params["w3"]), resident(params["b3"]),
            resident(w_head), resident(b_head),
        ],
        out_specs=pl.BlockSpec((tb, 2 * act_dim), lambda i: (i, 0)),
        out_shape=jax.ShapeDtypeStruct((b_pad, 2 * act_dim), jnp.float32),
        compiler_params=pltpu.CompilerParams(
            dimension_semantics=("parallel",)),
    )(x, eps,
      params["w1"], params["b1"],
      params["w2"], params["b2"],
      params["w3"], params["b3"],
      w_head, b_head)

    return out[:batch, :act_dim], out[:batch, act_dim:]


def _reference(x, eps, p):
    h = jax.nn.relu(x @ p["w1"] + p["b1"])
    h = jax.nn.relu(h @ p["w2"] + p["b2"])
    h = jax.nn.relu(h @ p["w3"] + p["b3"])
    mu = h @ p["wmu"] + p["bmu"]
    std = jax.nn.softplus(h @ p["wstd"] + p["bstd"])
    s = mu + std * eps
    lp = -0.5 * eps * eps - jnp.log(std) - _LOG_SQRT_2PI
    a = jnp.tanh(s)
    lp = lp - jnp.log(1.0 - a * a + 1e-6)
    act = LOW + (a + 1.0) * (HIGH - LOW) / 2.0
    return act, lp


if __name__ == "__main__":
    state_dim, hidden_dim, action_dim = 16, 32, 4

    key = jax.random.PRNGKey(0)
    keys = jax.random.split(key, 14)

    def linear_init(kw, kb, fan_in, fan_out):
        # PyTorch nn.Linear default init: U(-1/sqrt(fan_in), 1/sqrt(fan_in)).
        bound = 1.0 / math.sqrt(fan_in)
        w = jax.random.uniform(kw, (fan_in, fan_out), jnp.float32, -bound, bound)
        b = jax.random.uniform(kb, (1, fan_out), jnp.float32, -bound, bound)
        return w, b

    w1, b1 = linear_init(keys[0], keys[1], state_dim, hidden_dim)
    w2, b2 = linear_init(keys[2], keys[3], hidden_dim, hidden_dim)
    w3, b3 = linear_init(keys[4], keys[5], hidden_dim, hidden_dim)
    wmu, bmu = linear_init(keys[6], keys[7], hidden_dim, action_dim)
    wstd, bstd = linear_init(keys[8], keys[9], hidden_dim, action_dim)
    params = dict(w1=w1, b1=b1, w2=w2, b2=b2, w3=w3, b3=b3,
                  wmu=wmu, bmu=bmu, wstd=wstd, bstd=bstd)

    # Smoke test 1: batch=2 (single grid step, padded up to one 8-row tile).
    batch = 2
    x = jax.random.normal(keys[10], (batch, state_dim), jnp.float32)
    eps = jax.random.normal(keys[11], (batch, action_dim), jnp.float32)

    action, log_prob = policy_forward(x, eps, params)
    jax.block_until_ready((action, log_prob))

    ref_action, ref_log_prob = _reference(x, eps, params)
    assert action.shape == (batch, action_dim) and log_prob.shape == (batch, action_dim)
    assert jnp.allclose(action, ref_action, atol=1e-5, rtol=1e-5)
    assert jnp.allclose(log_prob, ref_log_prob, atol=1e-4, rtol=1e-4)

    # Smoke test 2: ragged batch with a multi-step grid (exercises batch padding,
    # pipelined batch tiles, and VMEM-resident weights across grid steps).
    batch2 = 20
    x2 = jax.random.normal(keys[12], (batch2, state_dim), jnp.float32)
    eps2 = jax.random.normal(keys[13], (batch2, action_dim), jnp.float32)
    action2, log_prob2 = policy_forward(x2, eps2, params, block_b=8)
    jax.block_until_ready((action2, log_prob2))
    ref_action2, ref_log_prob2 = _reference(x2, eps2, params)
    assert action2.shape == (batch2, action_dim)
    assert jnp.allclose(action2, ref_action2, atol=1e-5, rtol=1e-5)
    assert jnp.allclose(log_prob2, ref_log_prob2, atol=1e-4, rtol=1e-4)

    print("KERNEL_OK")
</pallas_src>

<mosaic_0001>
module attributes {stable_mosaic.version = 11 : i64} {
  func.func @_policy_kernel(%arg0: i32, %arg1: memref<8x16xf32, #tpu.memory_space<vmem>>, %arg2: memref<8x4xf32, #tpu.memory_space<vmem>>, %arg3: memref<16x32xf32, #tpu.memory_space<vmem>>, %arg4: memref<1x32xf32, #tpu.memory_space<vmem>>, %arg5: memref<32x32xf32, #tpu.memory_space<vmem>>, %arg6: memref<1x32xf32, #tpu.memory_space<vmem>>, %arg7: memref<32x32xf32, #tpu.memory_space<vmem>>, %arg8: memref<1x32xf32, #tpu.memory_space<vmem>>, %arg9: memref<32x8xf32, #tpu.memory_space<vmem>>, %arg10: memref<1x8xf32, #tpu.memory_space<vmem>>, %arg11: memref<8x8xf32, #tpu.memory_space<vmem>>) attributes {dimension_semantics = [#tpu.dimension_semantics<parallel>], iteration_bounds = array<i64: 1>, scalar_prefetch = 0 : i64, scratch_operands = 0 : i64, tpu.core_type = #tpu.core_type<tc>, window_params = [{transform_indices = @transform_0, window_bounds = array<i64: 8, 16>}, {transform_indices = @transform_1, window_bounds = array<i64: 8, 4>}, {pipeline_mode = #tpu.pipeline_mode<synchronous>, transform_indices = @transform_2, window_bounds = array<i64: 16, 32>}, {pipeline_mode = #tpu.pipeline_mode<synchronous>, transform_indices = @transform_3, window_bounds = array<i64: 1, 32>}, {pipeline_mode = #tpu.pipeline_mode<synchronous>, transform_indices = @transform_4, window_bounds = array<i64: 32, 32>}, {pipeline_mode = #tpu.pipeline_mode<synchronous>, transform_indices = @transform_5, window_bounds = array<i64: 1, 32>}, {pipeline_mode = #tpu.pipeline_mode<synchronous>, transform_indices = @transform_6, window_bounds = array<i64: 32, 32>}, {pipeline_mode = #tpu.pipeline_mode<synchronous>, transform_indices = @transform_7, window_bounds = array<i64: 1, 32>}, {pipeline_mode = #tpu.pipeline_mode<synchronous>, transform_indices = @transform_8, window_bounds = array<i64: 32, 8>}, {pipeline_mode = #tpu.pipeline_mode<synchronous>, transform_indices = @transform_9, window_bounds = array<i64: 1, 8>}, {transform_indices = @transform_10, window_bounds = array<i64: 8, 8>}]} {
    %c0 = arith.constant 0 : index
    %c0_0 = arith.constant 0 : index
    %0 = vector.load %arg1[%c0, %c0_0] : memref<8x16xf32, #tpu.memory_space<vmem>>, vector<8x16xf32>
    %c0_1 = arith.constant 0 : index
    %c0_2 = arith.constant 0 : index
    %1 = vector.load %arg3[%c0_1, %c0_2] : memref<16x32xf32, #tpu.memory_space<vmem>>, vector<16x32xf32>
    %cst = arith.constant dense<0.000000e+00> : vector<8x32xf32>
    %2 = tpu.matmul %0, %1, %cst {dimension_numbers = #tpu.dot_dimension_numbers<[1], [0], [0], [1], [0, 0, 1, 1], [], []>} : vector<8x16xf32>, vector<16x32xf32>, vector<8x32xf32> -> vector<8x32xf32>
    %c0_3 = arith.constant 0 : index
    %c0_4 = arith.constant 0 : index
    %3 = vector.load %arg4[%c0_3, %c0_4] : memref<1x32xf32, #tpu.memory_space<vmem>>, vector<1x32xf32>
    %4 = vector.broadcast %3 : vector<1x32xf32> to vector<8x32xf32>
    %5 = arith.addf %2, %4 : vector<8x32xf32>
    %cst_5 = arith.constant 0.000000e+00 : f32
    %6 = vector.broadcast %cst_5 : f32 to vector<8x32xf32>
    %7 = arith.maximumf %5, %6 : vector<8x32xf32>
    %c0_6 = arith.constant 0 : index
    %c0_7 = arith.constant 0 : index
    %8 = vector.load %arg5[%c0_6, %c0_7] : memref<32x32xf32, #tpu.memory_space<vmem>>, vector<32x32xf32>
    %cst_8 = arith.constant dense<0.000000e+00> : vector<8x32xf32>
    %9 = tpu.matmul %7, %8, %cst_8 {dimension_numbers = #tpu.dot_dimension_numbers<[1], [0], [0], [1], [0, 0, 1, 1], [], []>} : vector<8x32xf32>, vector<32x32xf32>, vector<8x32xf32> -> vector<8x32xf32>
    %c0_9 = arith.constant 0 : index
    %c0_10 = arith.constant 0 : index
    %10 = vector.load %arg6[%c0_9, %c0_10] : memref<1x32xf32, #tpu.memory_space<vmem>>, vector<1x32xf32>
    %11 = vector.broadcast %10 : vector<1x32xf32> to vector<8x32xf32>
    %12 = arith.addf %9, %11 : vector<8x32xf32>
    %cst_11 = arith.constant 0.000000e+00 : f32
    %13 = vector.broadcast %cst_11 : f32 to vector<8x32xf32>
    %14 = arith.maximumf %12, %13 : vector<8x32xf32>
    %c0_12 = arith.constant 0 : index
    %c0_13 = arith.constant 0 : index
    %15 = vector.load %arg7[%c0_12, %c0_13] : memref<32x32xf32, #tpu.memory_space<vmem>>, vector<32x32xf32>
    %cst_14 = arith.constant dense<0.000000e+00> : vector<8x32xf32>
    %16 = tpu.matmul %14, %15, %cst_14 {dimension_numbers = #tpu.dot_dimension_numbers<[1], [0], [0], [1], [0, 0, 1, 1], [], []>} : vector<8x32xf32>, vector<32x32xf32>, vector<8x32xf32> -> vector<8x32xf32>
    %c0_15 = arith.constant 0 : index
    %c0_16 = arith.constant 0 : index
    %17 = vector.load %arg8[%c0_15, %c0_16] : memref<1x32xf32, #tpu.memory_space<vmem>>, vector<1x32xf32>
    %18 = vector.broadcast %17 : vector<1x32xf32> to vector<8x32xf32>
    %19 = arith.addf %16, %18 : vector<8x32xf32>
    %cst_17 = arith.constant 0.000000e+00 : f32
    %20 = vector.broadcast %cst_17 : f32 to vector<8x32xf32>
    %21 = arith.maximumf %19, %20 : vector<8x32xf32>
    %c0_18 = arith.constant 0 : index
    %c0_19 = arith.constant 0 : index
    %22 = vector.load %arg9[%c0_18, %c0_19] : memref<32x8xf32, #tpu.memory_space<vmem>>, vector<32x8xf32>
    %cst_20 = arith.constant dense<0.000000e+00> : vector<8x8xf32>
    %23 = tpu.matmul %21, %22, %cst_20 {dimension_numbers = #tpu.dot_dimension_numbers<[1], [0], [0], [1], [0, 0, 1, 1], [], []>} : vector<8x32xf32>, vector<32x8xf32>, vector<8x8xf32> -> vector<8x8xf32>
    %c0_21 = arith.constant 0 : index
    %c0_22 = arith.constant 0 : index
    %24 = vector.load %arg10[%c0_21, %c0_22] : memref<1x8xf32, #tpu.memory_space<vmem>>, vector<1x8xf32>
    %25 = vector.broadcast %24 : vector<1x8xf32> to vector<8x8xf32>
    %26 = arith.addf %23, %25 : vector<8x8xf32>
    %27 = vector.extract_strided_slice %26 {offsets = [0, 0], sizes = [8, 4], strides = [1, 1]} : vector<8x8xf32> to vector<8x4xf32>
    %28 = vector.extract_strided_slice %26 {offsets = [0, 4], sizes = [8, 4], strides = [1, 1]} : vector<8x8xf32> to vector<8x4xf32>
    %cst_23 = arith.constant 0.000000e+00 : f32
    %29 = vector.broadcast %cst_23 : f32 to vector<8x4xf32>
    %30 = arith.maximumf %28, %29 : vector<8x4xf32>
    %31 = math.absf %28 : vector<8x4xf32>
    %cst_24 = arith.constant 0.000000e+00 : f32
    %32 = vector.broadcast %cst_24 : f32 to vector<8x4xf32>
    %33 = arith.subf %32, %31 : vector<8x4xf32>
    %34 = math.exp %33 : vector<8x4xf32>
    %cst_25 = arith.constant 1.000000e+00 : f32
    %35 = vector.broadcast %cst_25 : f32 to vector<8x4xf32>
    %36 = arith.addf %35, %34 : vector<8x4xf32>
    %37 = math.log %36 : vector<8x4xf32>
    %38 = arith.addf %30, %37 : vector<8x4xf32>
    %c0_26 = arith.constant 0 : index
    %c0_27 = arith.constant 0 : index
    %39 = vector.load %arg2[%c0_26, %c0_27] : memref<8x4xf32, #tpu.memory_space<vmem>>, vector<8x4xf32>
    %40 = arith.mulf %38, %39 : vector<8x4xf32>
    %41 = arith.addf %27, %40 : vector<8x4xf32>
    %42 = math.tanh %41 : vector<8x4xf32>
    %cst_28 = arith.constant -5.000000e-01 : f32
    %43 = vector.broadcast %cst_28 : f32 to vector<8x4xf32>
    %44 = arith.mulf %43, %39 : vector<8x4xf32>
    %45 = arith.mulf %44, %39 : vector<8x4xf32>
    %46 = arith.mulf %42, %42 : vector<8x4xf32>
    %cst_29 = arith.constant 1.000000e+00 : f32
    %47 = vector.broadcast %cst_29 : f32 to vector<8x4xf32>
    %48 = arith.subf %47, %46 : vector<8x4xf32>
    %cst_30 = arith.constant 9.99999997E-7 : f32
    %49 = vector.broadcast %cst_30 : f32 to vector<8x4xf32>
    %50 = arith.addf %48, %49 : vector<8x4xf32>
    %51 = arith.mulf %38, %50 : vector<8x4xf32>
    %52 = math.log %51 : vector<8x4xf32>
    %53 = arith.subf %45, %52 : vector<8x4xf32>
    %cst_31 = arith.constant 0.918938517 : f32
    %54 = vector.broadcast %cst_31 : f32 to vector<8x4xf32>
    %55 = arith.subf %53, %54 : vector<8x4xf32>
    %cst_32 = arith.constant 1.000000e+00 : f32
    %56 = vector.broadcast %cst_32 : f32 to vector<8x4xf32>
    %57 = arith.addf %42, %56 : vector<8x4xf32>
    %cst_33 = arith.constant 2.000000e+00 : f32
    %58 = vector.broadcast %cst_33 : f32 to vector<8x4xf32>
    %59 = arith.mulf %57, %58 : vector<8x4xf32>
    %cst_34 = arith.constant -2.000000e+00 : f32
    %60 = vector.broadcast %cst_34 : f32 to vector<8x4xf32>
    %61 = arith.addf %60, %59 : vector<8x4xf32>
    %62 = tpu.concatenate %61, %55 in 1 : vector<8x4xf32>, vector<8x4xf32> -> vector<8x8xf32>
    %c0_35 = arith.constant 0 : index
    %c0_36 = arith.constant 0 : index
    %63 = vector.load %arg11[%c0_35, %c0_36] : memref<8x8xf32, #tpu.memory_space<vmem>>, vector<8x8xf32>
    tpu.vector_store %arg11[%c0_35, %c0_36], %62 {strides = array<i32>} : memref<8x8xf32, #tpu.memory_space<vmem>>, vector<8x8xf32>,
    return
  }
  func.func @transform_0(%arg0: i32) -> (i32, i32) {
    %c0_i32 = arith.constant 0 : i32
    %c0_i32_0 = arith.constant 0 : i32
    return %arg0, %c0_i32 : i32, i32
  }
  func.func @transform_1(%arg0: i32) -> (i32, i32) {
    %c0_i32 = arith.constant 0 : i32
    %c0_i32_0 = arith.constant 0 : i32
    return %arg0, %c0_i32 : i32, i32
  }
  func.func @transform_2(%arg0: i32) -> (i32, i32) {
    %c0_i32 = arith.constant 0 : i32
    %c0_i32_0 = arith.constant 0 : i32
    %c0_i32_1 = arith.constant 0 : i32
    return %c0_i32, %c0_i32_0 : i32, i32
  }
  func.func @transform_3(%arg0: i32) -> (i32, i32) {
    %c0_i32 = arith.constant 0 : i32
    %c0_i32_0 = arith.constant 0 : i32
    %c0_i32_1 = arith.constant 0 : i32
    return %c0_i32, %c0_i32_0 : i32, i32
  }
  func.func @transform_4(%arg0: i32) -> (i32, i32) {
    %c0_i32 = arith.constant 0 : i32
    %c0_i32_0 = arith.constant 0 : i32
    %c0_i32_1 = arith.constant 0 : i32
    return %c0_i32, %c0_i32_0 : i32, i32
  }
  func.func @transform_5(%arg0: i32) -> (i32, i32) {
    %c0_i32 = arith.constant 0 : i32
    %c0_i32_0 = arith.constant 0 : i32
    %c0_i32_1 = arith.constant 0 : i32
    return %c0_i32, %c0_i32_0 : i32, i32
  }
  func.func @transform_6(%arg0: i32) -> (i32, i32) {
    %c0_i32 = arith.constant 0 : i32
    %c0_i32_0 = arith.constant 0 : i32
    %c0_i32_1 = arith.constant 0 : i32
    return %c0_i32, %c0_i32_0 : i32, i32
  }
  func.func @transform_7(%arg0: i32) -> (i32, i32) {
    %c0_i32 = arith.constant 0 : i32
    %c0_i32_0 = arith.constant 0 : i32
    %c0_i32_1 = arith.constant 0 : i32
    return %c0_i32, %c0_i32_0 : i32, i32
  }
  func.func @transform_8(%arg0: i32) -> (i32, i32) {
    %c0_i32 = arith.constant 0 : i32
    %c0_i32_0 = arith.constant 0 : i32
    %c0_i32_1 = arith.constant 0 : i32
    return %c0_i32, %c0_i32_0 : i32, i32
  }
  func.func @transform_9(%arg0: i32) -> (i32, i32) {
    %c0_i32 = arith.constant 0 : i32
    %c0_i32_0 = arith.constant 0 : i32
    %c0_i32_1 = arith.constant 0 : i32
    return %c0_i32, %c0_i32_0 : i32, i32
  }
  func.func @transform_10(%arg0: i32) -> (i32, i32) {
    %c0_i32 = arith.constant 0 : i32
    %c0_i32_0 = arith.constant 0 : i32
    return %arg0, %c0_i32 : i32, i32
  }
}

</mosaic_0001>

<bundles_post_ra>
// kernel: tpu_custom_call.1
= control target key start
LH: loop header
LB: loop body
LE: loop exit
PB: predicated region body
PF: predicated region fallthrough
CT: control target
= control target key end

     0   :  { %15 = vsyncpa [#allocation3], 0  ;;  %s746_s0 = inlined_call_operand.hbm [shape: f32[8,16], index: 0, kind: input, shape index: {}]   ;;  %s747_s1 = inlined_call_operand.vmem [shape: f32[8,4], index: 1, kind: input, shape index: {}]   ;;  %s748_s2 = inlined_call_operand.vmem [shape: f32[16,32], index: 2, kind: input, shape index: {}]   ;;  %s749_s3 = inlined_call_operand.vmem [shape: f32[1,32], index: 3, kind: input, shape index: {}]   ;;  %s750_s4 = inlined_call_operand.vmem [shape: f32[32,32], index: 4, kind: input, shape index: {}]   ;;  %s751_s5 = inlined_call_operand.vmem [shape: f32[1,32], index: 5, kind: input, shape index: {}]   ;;  %s752_s6 = inlined_call_operand.hbm [shape: f32[32,32], index: 6, kind: input, shape index: {}]   ;;  %s753_s7 = inlined_call_operand.vmem [shape: f32[1,32], index: 7, kind: input, shape index: {}]   ;;  %s754_s8 = inlined_call_operand.vmem [shape: f32[32,8], index: 8, kind: input, shape index: {}]   ;;  %s755_s9 = inlined_call_operand.vmem [shape: f32[1,8], index: 9, kind: input, shape index: {}]   ;;  %s756_s10 = inlined_call_operand.hbm [shape: f32[8,8], index: 10, kind: output, shape index: {}]  }
   0x1   :  { %16 = vsyncpa [#allocation6], 0 }
   0x2   :  { %17 = vsyncpa [#allocation4], 0  ;;  %s618_s13 = smov [#allocation2]   ;;  %s619_s15 = smov [#allocation5]  }
   0x3   :  { %s24_s14 = sshll.u32 %s618_s13, 4  ;;  %s43_s16 = sshll.u32 %s619_s15, 4  ;;  %s25_s14 = int_to_ptr.vmem [resolvable:$true] %s24_s14  ;;  %s44_s16 = int_to_ptr.vmem [resolvable:$true] %s43_s16 }
   0x4   :  { %s560_s17 = scalar_lea.vmem %s25_s14, 128  ;;  %p565_p1 = scmp.lt.s32.totalorder %s25_s14, %s25_s14 }
   0x5   :  { %p561_p0 = scmp.ne.s32.totalorder %s25_s14, %s560_s17  ;;  %p566_p2 = scmp.lt.s32.totalorder %s560_s17, %s560_s17 }
   0x7   :  { %p567_p3 = por %p566_p2, %p565_p1 }
   0x9   :  { %p568_p4 = pnand %p567_p3, %p561_p0 }
   0xb   :  { %571 = shalt.err (!%p568_p4)
}
   0xc   :  { %27 = dma.hbm_to_vmem [thread:$0]  %s746_s0, 128, %s25_s14, [#allocation3]  }
   0xd   :  { %s580_s20 = scalar_lea.vmem %s44_s16, 512  ;;  %p585_p6 = scmp.lt.s32.totalorder %s44_s16, %s44_s16 }
   0xe   :  { %p581_p5 = scmp.ne.s32.totalorder %s44_s16, %s580_s20  ;;  %p586_p7 = scmp.lt.s32.totalorder %s580_s20, %s580_s20 }
  0x10   :  { %p587_p8 = por %p586_p7, %p585_p6 }
  0x12   :  { %p588_p9 = pnand %p587_p8, %p581_p5 }
  0x14   :  { %591 = shalt.err (!%p588_p9)
}
  0x15   :  { %s620_s21 = smov 128   ;;  %s621_s22 = smov 8  }
  0x16   :  { %49 = dma.hbm_to_vmem [thread:$0]  %s752_s6, 512, %s44_s16, [#allocation6], %s620_s21, %s620_s21, %s621_s22  }
  0x17   :  { %612 = dma.done.wait [#allocation3], 128  }
  0x18   :  { %613 = vsyncadd [#allocation3], 4294967168 }
  0x19   :  { %614 = dma.done.wait [#allocation6], 512  }
  0x1a   :  { %615 = vsyncadd [#allocation6], 4294966784  ;;  %v622_v0 = vmov 0.0   ;;  %vm623_vm0 = vmmov 0   ;;  %v64_v1 = vld [vmem:[%s748_s2 + $0x8] sm:$0xff]  ;;  %v63_v2 = vld [vmem:[%s748_s2] sm:$0xff] }
  0x1b   :  { %495 = vmatprep.subr.mxu0 %v622_v0  ;;  %499 = vmatprep.mubr.msk.f32.mxu0 %vm623_vm0, %v622_v0  ;;  %v62_v3 = vld [vmem:[#allocation2] sm:$0xff]  ;;  %vm72_vm1 = vcmask 130048   ;;  %v150_v4 = vld [vmem:[%s750_s4 + $0x18] sm:$0xff]  ;;  %v149_v5 = vld [vmem:[%s750_s4 + $0x10] sm:$0xff]  ;;  %vm158_vm2 = vcmask 261120   ;;  %s624_s0 = smov 4  }
  0x1c   :  { %502 = vmatprep.subr.mxu1 %v622_v0  ;;  %510 = vmatprep.mubr.msk.f32.mxu1 %vm623_vm0, %v622_v0  ;;  %v148_v6 = vld [vmem:[%s750_s4 + $0x8] sm:$0xff]  ;;  %v147_v7 = vld [vmem:[%s750_s4] sm:$0xff]  ;;  %v235_v14 = vld [vmem:[#allocation5 + $0x10] sm:$0xff]  ;;  %vm448_vm3 = vcmask 31744   ;;  %vm450_vm4 = vcmask 64512  }
  0x1d   :  { %496 = vmatpush3.msra.mxu0 %v64_v1  ;;  %503 = vmatpush3.msra.mxu1 %v150_v4  ;;  %v236_v8 = vld [vmem:[#allocation5 + $0x18] sm:$0xff]  ;;  %v234_v15 = vld [vmem:[#allocation5 + $0x8] sm:$0xff]  ;;  %v233_v16 = vld [vmem:[#allocation5] sm:$0xff] }
  0x1e   :  { %497 = vmatprep.subr.mxu0 %v622_v0  ;;  %504 = vmatprep.subr.mxu1 %v622_v0  ;;  %v468_v9 = vld [vmem:[%s749_s3] ss:$0 sm:$0xff]  ;;  %v321_v17 = vld [vmem:[%s754_s8 + $0x18] sm:$0xff]  ;;  %v320_v23 = vld [vmem:[%s754_s8 + $0x10] sm:$0xff] }
  0x1f   :  { %498 = vmatpush3.msra.mxu0 %v63_v2  ;;  %505 = vmatpush3.msra.mxu1 %v149_v5  ;;  %v470_v18 = vld [vmem:[%s751_s5] ss:$0 sm:$0xff]  ;;  %v319_v24 = vld [vmem:[%s754_s8 + $0x8] sm:$0xff] }
  0x20   :  { %500 = vmatmul.mubr.msk.f32.vlgmr.msra.gmra.mxu0 %vm72_vm1, %v62_v3  ;;  %513 = vmatprep.subr.mxu0 %v622_v0  ;;  %v318_v25 = vld [vmem:[%s754_s8] sm:$0xff] }
  0x21   :  { %521 = vmatprep.mubr.msk.f32.mxu0 %vm623_vm0, %v622_v0  ;;  %506 = vmatprep.subr.mxu1 %v622_v0  ;;  %v411_v26 = vld [vmem:[%s747_s1] sm:$0xff]  ;;  %s625_s1 = smov 124  }
  0x22   :  { %507 = vmatpush3.msra.mxu1 %v148_v6  ;;  %514 = vmatpush3.msra.mxu0 %v236_v8  ;;  %v472_v27 = vld [vmem:[%s753_s7] ss:$0 sm:$0xff]  ;;  %v423_v57 = vmul.f32 -0.5, %v411_v26  ;;  %s626_s7 = smov [#allocation7]  }
  0x23   :  { %508 = vmatprep.subr.mxu1 %v622_v0  ;;  %515 = vmatprep.subr.mxu0 %v622_v0  ;;  %v474_v32 = vld [vmem:[%s755_s9] ss:$0 sm:$0xff]  ;;  %s458_s9 = sshll.u32 %s626_s7, 4  ;;  %s459_s9 = int_to_ptr.vmem [resolvable:$true] %s458_s9 }
  0x24   :  { %509 = vmatpush3.msra.mxu1 %v147_v7  ;;  %516 = vmatpush3.msra.mxu0 %v235_v14  ;;  %v424_v58 = vmul.f32 %v423_v57, %v411_v26  ;;  %s592_s6 = scalar_lea.vmem %s459_s9, 128  ;;  %p597_p11 = scmp.lt.s32.totalorder %s459_s9, %s459_s9 }
  0x25   :  { %524 = vmatprep.subr.mxu1 %v622_v0  ;;  %517 = vmatprep.subr.mxu0 %v622_v0  ;;  %p593_p10 = scmp.ne.s32.totalorder %s459_s9, %s592_s6  ;;  %p598_p12 = scmp.lt.s32.totalorder %s592_s6, %s592_s6 }
  0x26   :  { %518 = vmatpush3.msra.mxu0 %v234_v15  ;;  %413 = vrot.lane.b32.xlu0 %v411_v26, %s624_s0 }
  0x27   :  { %519 = vmatprep.subr.mxu0 %v622_v0  ;;  %p599_p13 = por %p598_p12, %p597_p11 }
  0x28   :  { %520 = vmatpush3.msra.mxu0 %v233_v16 }
  0x29   :  { %p600_p0 = pnand %p599_p13, %p593_p10 }
  0x98   :  { %v414_v44 = vpop.permute.xlu0 %413 }
  0xe0   :  { %v142_v10 = vpop.f32.mrf.mxu0 }
  0xe1   :  { %v143_v11 = vadd.f32 %v468_v9, %v142_v10 }
  0xe2   :  { %v501_v12 = vpop.f32.mrf.mxu0 }
  0xe3   :  { %v146_v13 = vmax.f32 %v143_v11, 0.0 }
  0xe5   :  { %511 = vmatmul.mubr.msk.f32.vlgmr.msra.gmra.mxu1 %vm158_vm2, %v146_v13 }
  0xe6   :  { %532 = vmatprep.mubr.msk.f32.mxu1 %vm623_vm0, %v622_v0  ;;  %525 = vmatpush3.msra.mxu1 %v321_v17 }
  0xe7   :  { %526 = vmatprep.subr.mxu1 %v622_v0 }
  0xe8   :  { %527 = vmatpush3.msra.mxu1 %v320_v23 }
  0xe9   :  { %528 = vmatprep.subr.mxu1 %v622_v0 }
  0xea   :  { %529 = vmatpush3.msra.mxu1 %v319_v24 }
  0xeb   :  { %530 = vmatprep.subr.mxu1 %v622_v0 }
  0xec   :  { %531 = vmatpush3.msra.mxu1 %v318_v25 }
 0x1a5   :  { %v228_v19 = vpop.f32.mrf.mxu1 }
 0x1a6   :  { %v229_v20 = vadd.f32 %v470_v18, %v228_v19 }
 0x1a7   :  { %v512_v21 = vpop.f32.mrf.mxu1 }
 0x1a8   :  { %v232_v22 = vmax.f32 %v229_v20, 0.0 }
 0x1aa   :  { %522 = vmatmul.mubr.msk.f32.vlgmr.msra.gmra.mxu0 %vm158_vm2, %v232_v22 }
 0x26a   :  { %v313_v28 = vpop.f32.mrf.mxu0 }
 0x26b   :  { %v314_v29 = vadd.f32 %v472_v27, %v313_v28 }
 0x26c   :  { %v523_v30 = vpop.f32.mrf.mxu0 }
 0x26d   :  { %v317_v31 = vmax.f32 %v314_v29, 0.0 }
 0x26f   :  { %533 = vmatmul.mubr.msk.f32.vlgmr.msra.gmra.mxu1 %vm158_vm2, %v317_v31 }
 0x32f   :  { %v398_v33 = vpop.f32.mrf.mxu1 }
 0x330   :  { %v399_v34 = vadd.f32 %v474_v32, %v398_v33 }
 0x331   :  { %v534_v35 = vpop.f32.mrf.mxu1 }
 0x332   :  { %v403_v36 = vand.u32 2147483647, %v399_v34  ;;  %v402_v42 = vmax.f32 %v399_v34, 0.0 }
 0x334   :  { %v404_v37 = vsub.f32 0.0, %v403_v36 }
 0x336   :  { %v405_v38 = vmul.f32 1.442695, %v404_v37 }
 0x338   :  { %544 = vpow2.f32 %v405_v38 }
 0x345   :  { %v545_v39 = vpop.eup %544 }
 0x346   :  { %v407_v40 = vadd.f32 1.0, %v545_v39 }
 0x348   :  { %546 = vlog2.f32 %v407_v40 }
 0x355   :  { %v547_v41 = vpop.eup %546 }
 0x356   :  { %v409_v43 = vmul.f32 0.6931472, %v547_v41 }
 0x358   :  { %v410_v45 = vadd.f32 %v409_v43, %v402_v42 }
 0x35a   :  { %v416_v46 = vmul.f32 %v414_v44, %v410_v45 }
 0x35c   :  { %418 = vrot.lane.b32.xlu0 %v416_v46, %s625_s1 }
 0x3ce   :  { %v419_v47 = vpop.permute.xlu0 %418 }
 0x3cf   :  { %v421_v48 = vadd.f32 %v419_v47, %v399_v34 }
 0x3d1   :  { %548 = vtanh.f32 %v421_v48 }
 0x3de   :  { %v549_v49 = vpop.eup %548 }
 0x3df   :  { %v425_v50 = vmul.f32 %v549_v49, %v549_v49  ;;  %v441_v62 = vadd.f32 1.0, %v549_v49 }
 0x3e1   :  { %v426_v51 = vsub.f32 1.0, %v425_v50  ;;  %v442_v63 = vmul.f32 2.0, %v441_v62 }
 0x3e3   :  { %v427_v52 = vadd.f32 1e-06, %v426_v51  ;;  %v443_v0 = vadd.f32 -2.0, %v442_v63 }
 0x3e5   :  { %429 = vrot.lane.b32.xlu1 %v427_v52, %s624_s0 }
 0x457   :  { %v430_v53 = vpop.permute.xlu1 %429 }
 0x458   :  { %v432_v54 = vmul.f32 %v430_v53, %v410_v45 }
 0x45a   :  { %550 = vlog2.f32 %v432_v54 }
 0x467   :  { %v551_v55 = vpop.eup %550 }
 0x468   :  { %v434_v56 = vmul.f32 0.6931472, %v551_v55 }
 0x46a   :  { %436 = vrot.lane.b32.xlu1 %v434_v56, %s625_s1 }
 0x4dc   :  { %v437_v59 = vpop.permute.xlu1 %436 }
 0x4dd   :  { %v439_v60 = vsub.f32 %v424_v58, %v437_v59 }
 0x4df   :  { %v476_v61 = vadd.f32 -0.9189385, %v439_v60 }
 0x4e1   :  { %445 = vrot.lane.b32.xlu0 %v476_v61, %s624_s0 }
 0x553   :  { %v446_v1 = vpop.permute.xlu0 %445 }
 0x554   :  { %v449_v2 = vsel %vm448_vm3, %v443_v0, %v446_v1 }
 0x555   :  { %451 = vst.msk [vmem:[#allocation7] sm:$0xff] %vm450_vm4, %v449_v2 }
 0x556   :  { %603 = shalt.err (!%p600_p0)
}
 0x557   :  { %461 = dma.vmem_to_hbm [thread:$0]  %s459_s9, 128, %s756_s10, [#allocation4]  }
 0x558   :  { %616 = dma.done.wait [#allocation4], 128  }
 0x559   :  { %617 = vsyncadd [#allocation4], 4294967168 }
 0x55a   :  { %465 = vsyncpa [#allocation3], 1 }
 0x55b   :  { %466 = vsyncpa [#allocation6], 1 }
 0x55c   :  { %467 = vsyncpa [#allocation4], 1 }

</bundles_post_ra>
